<compile_context>
chip_gen: v7x
topology: tpu7x:2x2x1
jax: 0.10.0
libtpu: 0.0.40
codegen_flags: <defaults>
</compile_context>

<pallas_src>
import math

import jax
import jax.numpy as jnp
from jax.experimental import pallas as pl
from jax.experimental.pallas import tpu as pltpu


def mix_kernel(x_ref, cos_ref, sin_ref, mw1_ref, mw3_ref, wot_ref, o_ref):
    Bt, S, D = x_ref.shape
    S_hid = mw1_ref.shape[0]
    M = Bt * S

    # --- RoPE, interleaved layout, fully in-kernel -----------------------------
    # xr[2i]   = x[2i]*cos[i] - x[2i+1]*sin[i]
    # xr[2i+1] = x[2i+1]*cos[i] + x[2i]*sin[i]
    # => xr = x*C + swap_pairs(x)*Ssign, with C/Ssign precomputed (S, D) tables.
    # swap_pairs: even lane d takes x[d+1], odd lane d takes x[d-1]
    # (two lane rolls on the XLU + one VPU select; roll matches jnp.roll).
    x3 = x_ref[...]                                     # (Bt, S, D)
    x2 = x3.reshape(M, D)                               # layout-trivial merge
    x_next = pltpu.roll(x2, shift=D - 1, axis=1)        # x[d+1] at position d
    x_prev = pltpu.roll(x2, shift=1, axis=1)            # x[d-1] at position d
    lane = jax.lax.broadcasted_iota(jnp.int32, (M, D), 1)
    x_sw = jnp.where(lane % 2 == 0, x_next, x_prev).reshape(Bt, S, D)
    xr = x3 * cos_ref[...] + x_sw * sin_ref[...]        # broadcast (S,D) over batch

    # --- FeedForward + wm with the causal mask folded into the weights ---------
    # mid[b,s,d] = sum_j silu(xr * mw1[j,s,d]) * xr * mw3[j,s,d]
    # Accumulating unrolled loop keeps only a handful of vregs live.
    def body(j, acc):
        h1 = xr * mw1_ref[j]
        h3 = xr * mw3_ref[j]
        return acc + (h1 * jax.nn.sigmoid(h1)) * h3

    mid = jax.lax.fori_loop(0, S_hid, body, jnp.zeros_like(xr), unroll=True)

    # --- wo: one lane-dense MXU matmul over all (batch*seq) rows ---------------
    out = jnp.dot(mid.reshape(M, D), wot_ref[...],
                  preferred_element_type=jnp.float32)
    o_ref[...] = out.reshape(Bt, S, D).astype(o_ref.dtype)


def mix_precompute(cos, sin, mask, w1, w2, w3, wm, wo):
    """One-time (model-init) preprocessing. Everything here is x-independent."""
    S, H = cos.shape
    D = wo.shape[0]
    assert D == 2 * H and D % 2 == 0
    assert sin.shape == (S, H) and mask.shape == (S, S)

    # Interleaved RoPE tables: C[2i]=C[2i+1]=cos[i]; Ssign[2i]=-sin[i], Ssign[2i+1]=+sin[i]
    cos_il = jnp.repeat(cos, 2, axis=-1)                        # (S, D)
    sin_il = jnp.stack([-sin, sin], axis=-1).reshape(S, D)      # (S, D)

    # Fold the multiplicative causal mask into w1/w3 and collapse (w2, wm) into a
    # per-hidden-unit scale; pre-broadcast once to lane-dense (S_hid, S, D) constants.
    mw1 = mask @ w1.T                                           # (S_seq, S_hid)
    w2wm = (wm @ w2)[0]                                         # (S_hid,)
    mw3 = (mask @ w3.T) * w2wm[None, :]                         # (S_seq, S_hid)
    S_hid = mw1.shape[1]
    mw1b = jnp.broadcast_to(mw1.T[:, :, None], (S_hid, S, D))   # (S_hid, S, D)
    mw3b = jnp.broadcast_to(mw3.T[:, :, None], (S_hid, S, D))
    wot = wo.T                                                  # (D, D)
    return dict(cos=cos_il, sin=sin_il, mw1=mw1b, mw3=mw3b, wot=wot)


def mix_forward(x, params):
    """Per-call path: one pallas_call, no per-call weight preprocessing."""
    B, S, D = x.shape
    cos, sin = params["cos"], params["sin"]
    mw1, mw3, wot = params["mw1"], params["mw3"], params["wot"]
    S_hid = mw1.shape[0]

    # Batch tiling: a single fat grid step unless there is enough work to make a
    # megacore (v7x) split worthwhile (>= 128 rows per TensorCore per step).
    split = (B % 2 == 0) and ((B // 2) * S >= 128)
    b_tile = B // 2 if split else B
    grid = (B // b_tile,)
    dims = ("parallel",) if grid[0] > 1 else ("arbitrary",)

    return pl.pallas_call(
        mix_kernel,
        out_shape=jax.ShapeDtypeStruct((B, S, D), x.dtype),
        grid_spec=pltpu.PrefetchScalarGridSpec(
            num_scalar_prefetch=0,
            grid=grid,
            in_specs=[
                pl.BlockSpec((b_tile, S, D), lambda b: (b, 0, 0)),   # x (original d order)
                pl.BlockSpec((S, D), lambda b: (0, 0)),              # cos (interleaved)
                pl.BlockSpec((S, D), lambda b: (0, 0)),              # sin (signed, interleaved)
                pl.BlockSpec((S_hid, S, D), lambda b: (0, 0, 0)),    # mask @ w1^T
                pl.BlockSpec((S_hid, S, D), lambda b: (0, 0, 0)),    # mask @ w3^T * (wm@w2)
                pl.BlockSpec((D, D), lambda b: (0, 0)),              # wo^T
            ],
            out_specs=pl.BlockSpec((b_tile, S, D), lambda b: (b, 0, 0)),
        ),
        compiler_params=pltpu.CompilerParams(dimension_semantics=dims),
    )(x, cos, sin, mw1, mw3, wot)


def mix_ref(x, cos, sin, mask, w1, w2, w3, wm, wo):
    """Pure-JAX mirror of the PyTorch forward (for correctness check)."""
    B, S, D = x.shape
    xe, xo = x[..., 0::2], x[..., 1::2]
    re = xe * cos - xo * sin
    ro = xe * sin + xo * cos
    xr = jnp.stack([re, ro], axis=-1).reshape(B, S, D)        # apply_rotary_emb
    xt = jnp.transpose(xr, (0, 2, 1))                         # (B, D, S)
    xt = xt[..., None] * mask[None, None, :, :]               # (B, D, S, S)
    h = jax.nn.silu(xt @ w1.T) * (xt @ w3.T)
    y = h @ w2.T
    out = (y @ wm.T)[..., 0]                                  # (B, D, S)
    out = jnp.transpose(out, (0, 2, 1))                       # (B, S, D)
    return out @ wo.T


if __name__ == "__main__":
    # Small shapes consistent with the module: seqlen must equal max_seq_len
    # (the FeedForward / wm act on the seq axis).  batch=2, seq=8, dim=128.
    B, S, D = 2, 8, 128
    key = jax.random.PRNGKey(0)
    k = jax.random.split(key, 6)

    def linear_init(kk, out_f, in_f):
        bound = 1.0 / math.sqrt(in_f)
        return jax.random.uniform(kk, (out_f, in_f), jnp.float32, -bound, bound)

    w1 = linear_init(k[0], S, S)        # ff.w1: Linear(S, S, bias=False)
    w2 = linear_init(k[1], S, S)        # ff.w2
    w3 = linear_init(k[2], S, S)        # ff.w3
    wm = linear_init(k[3], 1, S)        # wm: Linear(S, 1, bias=False)
    wo = linear_init(k[4], D, D)        # wo: Linear(D, D, bias=False)
    x = jax.random.normal(k[5], (B, S, D), jnp.float32)

    # llama-style freqs_cis = cos(angles) + i*sin(angles), shape (S, D//2)
    inv_freq = 1.0 / (10000.0 ** (jnp.arange(0, D, 2, dtype=jnp.float32) / D))
    ang = jnp.arange(S, dtype=jnp.float32)[:, None] * inv_freq[None, :]
    cos, sin = jnp.cos(ang), jnp.sin(ang)

    # multiplicative causal mask, broadcasts over (b, d) exactly as in torch
    mask = jnp.tril(jnp.ones((S, S), jnp.float32))

    # One-time init (hoisted out of the per-call path).
    params = mix_precompute(cos, sin, mask, w1, w2, w3, wm, wo)
    params = jax.tree_util.tree_map(jax.block_until_ready, params)

    fwd = jax.jit(mix_forward)
    out = jax.block_until_ready(fwd(x, params))
    ref = jax.block_until_ready(mix_ref(x, cos, sin, mask, w1, w2, w3, wm, wo))
    assert out.shape == (B, S, D)
    assert jnp.allclose(out, ref, rtol=1e-4, atol=1e-4), \
        float(jnp.max(jnp.abs(out - ref)))
    print("KERNEL_OK")
</pallas_src>

<mosaic_0001>
module attributes {stable_mosaic.version = 11 : i64} {
  func.func @mix_kernel(%arg0: i32, %arg1: memref<2x8x128xf32, #tpu.memory_space<vmem>>, %arg2: memref<8x128xf32, #tpu.memory_space<vmem>>, %arg3: memref<8x128xf32, #tpu.memory_space<vmem>>, %arg4: memref<8x8x128xf32, #tpu.memory_space<vmem>>, %arg5: memref<8x8x128xf32, #tpu.memory_space<vmem>>, %arg6: memref<128x128xf32, #tpu.memory_space<vmem>>, %arg7: memref<2x8x128xf32, #tpu.memory_space<vmem>>) attributes {dimension_semantics = [#tpu.dimension_semantics<arbitrary>], iteration_bounds = array<i64: 1>, scalar_prefetch = 0 : i64, scratch_operands = 0 : i64, tpu.core_type = #tpu.core_type<tc>, window_params = [{transform_indices = @transform_0, window_bounds = array<i64: 2, 8, 128>}, {pipeline_mode = #tpu.pipeline_mode<synchronous>, transform_indices = @transform_1, window_bounds = array<i64: 8, 128>}, {pipeline_mode = #tpu.pipeline_mode<synchronous>, transform_indices = @transform_2, window_bounds = array<i64: 8, 128>}, {pipeline_mode = #tpu.pipeline_mode<synchronous>, transform_indices = @transform_3, window_bounds = array<i64: 8, 8, 128>}, {pipeline_mode = #tpu.pipeline_mode<synchronous>, transform_indices = @transform_4, window_bounds = array<i64: 8, 8, 128>}, {pipeline_mode = #tpu.pipeline_mode<synchronous>, transform_indices = @transform_5, window_bounds = array<i64: 128, 128>}, {transform_indices = @transform_6, window_bounds = array<i64: 2, 8, 128>}]} {
    %c0 = arith.constant 0 : index
    %c0_0 = arith.constant 0 : index
    %c0_1 = arith.constant 0 : index
    %0 = vector.load %arg1[%c0, %c0_0, %c0_1] : memref<2x8x128xf32, #tpu.memory_space<vmem>>, vector<2x8x128xf32>
    %1 = vector.shape_cast %0 : vector<2x8x128xf32> to vector<16x128xf32>
    %c127_i32 = arith.constant 127 : i32
    %2 = tpu.dynamic_rotate %1 by %c127_i32 dim 1 : vector<16x128xf32>, i32 -> vector<16x128xf32>
    %c1_i32 = arith.constant 1 : i32
    %3 = tpu.dynamic_rotate %1 by %c1_i32 dim 1 : vector<16x128xf32>, i32 -> vector<16x128xf32>
    %4 = tpu.iota {dimensions = array<i32: 1>} : vector<16x128xi32>
    %c2_i32 = arith.constant 2 : i32
    %c0_i32 = arith.constant 0 : i32
    %5 = arith.cmpi eq, %c2_i32, %c0_i32 : i32
    %c1_i32_2 = arith.constant 1 : i32
    %6 = arith.select %5, %c1_i32_2, %c2_i32 : i32
    %7 = vector.broadcast %6 : i32 to vector<16x128xi32>
    %8 = arith.remsi %4, %7 : vector<16x128xi32>
    %c0_i32_3 = arith.constant 0 : i32
    %9 = vector.broadcast %c0_i32_3 : i32 to vector<16x128xi32>
    %10 = arith.cmpi ne, %8, %9 : vector<16x128xi32>
    %c0_i32_4 = arith.constant 0 : i32
    %11 = vector.broadcast %c0_i32_4 : i32 to vector<16x128xi32>
    %12 = arith.cmpi slt, %8, %11 : vector<16x128xi32>
    %c0_i32_5 = arith.constant 0 : i32
    %13 = arith.cmpi slt, %6, %c0_i32_5 : i32
    %14 = vector.broadcast %13 : i1 to vector<16x128xi1>
    %15 = vector.broadcast %14 : vector<16x128xi1> to vector<16x128xi1>
    %16 = arith.xori %12, %15 : vector<16x128xi1>
    %17 = arith.andi %16, %10 : vector<16x128xi1>
    %18 = vector.broadcast %6 : i32 to vector<16x128xi32>
    %19 = arith.addi %8, %18 : vector<16x128xi32>
    %20 = arith.select %17, %19, %8 : vector<16x128xi1>, vector<16x128xi32>
    %c0_i32_6 = arith.constant 0 : i32
    %21 = vector.broadcast %c0_i32_6 : i32 to vector<16x128xi32>
    %22 = arith.cmpi eq, %20, %21 : vector<16x128xi32>
    %23 = arith.select %22, %2, %3 : vector<16x128xi1>, vector<16x128xf32>
    %24 = vector.shape_cast %23 : vector<16x128xf32> to vector<2x8x128xf32>
    %c0_7 = arith.constant 0 : index
    %c0_8 = arith.constant 0 : index
    %25 = vector.load %arg2[%c0_7, %c0_8] : memref<8x128xf32, #tpu.memory_space<vmem>>, vector<8x128xf32>
    %26 = vector.shape_cast %25 : vector<8x128xf32> to vector<1x8x128xf32>
    %27 = vector.broadcast %26 : vector<1x8x128xf32> to vector<2x8x128xf32>
    %28 = arith.mulf %0, %27 : vector<2x8x128xf32>
    %c0_9 = arith.constant 0 : index
    %c0_10 = arith.constant 0 : index
    %29 = vector.load %arg3[%c0_9, %c0_10] : memref<8x128xf32, #tpu.memory_space<vmem>>, vector<8x128xf32>
    %30 = vector.shape_cast %29 : vector<8x128xf32> to vector<1x8x128xf32>
    %31 = vector.broadcast %30 : vector<1x8x128xf32> to vector<2x8x128xf32>
    %32 = arith.mulf %24, %31 : vector<2x8x128xf32>
    %33 = arith.addf %28, %32 : vector<2x8x128xf32>
    %cst = arith.constant 0.000000e+00 : f32
    %34 = vector.broadcast %cst : f32 to vector<2x8x128xf32>
    %c0_i32_11 = arith.constant 0 : i32
    %35 = arith.index_cast %c0_i32_11 : i32 to index
    %c0_12 = arith.constant 0 : index
    %c0_13 = arith.constant 0 : index
    %36 = vector.load %arg4[%35, %c0_12, %c0_13] : memref<8x8x128xf32, #tpu.memory_space<vmem>>, vector<1x8x128xf32>
    %37 = vector.shape_cast %36 : vector<1x8x128xf32> to vector<8x128xf32>
    %38 = vector.shape_cast %37 : vector<8x128xf32> to vector<1x8x128xf32>
    %39 = vector.broadcast %38 : vector<1x8x128xf32> to vector<2x8x128xf32>
    %40 = arith.mulf %33, %39 : vector<2x8x128xf32>
    %41 = arith.index_cast %c0_i32_11 : i32 to index
    %c0_14 = arith.constant 0 : index
    %c0_15 = arith.constant 0 : index
    %42 = vector.load %arg5[%41, %c0_14, %c0_15] : memref<8x8x128xf32, #tpu.memory_space<vmem>>, vector<1x8x128xf32>
    %43 = vector.shape_cast %42 : vector<1x8x128xf32> to vector<8x128xf32>
    %44 = vector.shape_cast %43 : vector<8x128xf32> to vector<1x8x128xf32>
    %45 = vector.broadcast %44 : vector<1x8x128xf32> to vector<2x8x128xf32>
    %46 = arith.mulf %33, %45 : vector<2x8x128xf32>
    %47 = arith.negf %40 : vector<2x8x128xf32>
    %48 = math.exp %47 : vector<2x8x128xf32>
    %cst_16 = arith.constant 1.000000e+00 : f32
    %49 = vector.broadcast %cst_16 : f32 to vector<2x8x128xf32>
    %50 = arith.addf %49, %48 : vector<2x8x128xf32>
    %51 = arith.divf %49, %50 : vector<2x8x128xf32>
    %52 = arith.mulf %40, %51 : vector<2x8x128xf32>
    %53 = arith.mulf %52, %46 : vector<2x8x128xf32>
    %54 = arith.addf %34, %53 : vector<2x8x128xf32>
    %c1_i32_17 = arith.constant 1 : i32
    %55 = arith.index_cast %c1_i32_17 : i32 to index
    %c0_18 = arith.constant 0 : index
    %c0_19 = arith.constant 0 : index
    %56 = vector.load %arg4[%55, %c0_18, %c0_19] : memref<8x8x128xf32, #tpu.memory_space<vmem>>, vector<1x8x128xf32>
    %57 = vector.shape_cast %56 : vector<1x8x128xf32> to vector<8x128xf32>
    %58 = vector.shape_cast %57 : vector<8x128xf32> to vector<1x8x128xf32>
    %59 = vector.broadcast %58 : vector<1x8x128xf32> to vector<2x8x128xf32>
    %60 = arith.mulf %33, %59 : vector<2x8x128xf32>
    %61 = arith.index_cast %c1_i32_17 : i32 to index
    %c0_20 = arith.constant 0 : index
    %c0_21 = arith.constant 0 : index
    %62 = vector.load %arg5[%61, %c0_20, %c0_21] : memref<8x8x128xf32, #tpu.memory_space<vmem>>, vector<1x8x128xf32>
    %63 = vector.shape_cast %62 : vector<1x8x128xf32> to vector<8x128xf32>
    %64 = vector.shape_cast %63 : vector<8x128xf32> to vector<1x8x128xf32>
    %65 = vector.broadcast %64 : vector<1x8x128xf32> to vector<2x8x128xf32>
    %66 = arith.mulf %33, %65 : vector<2x8x128xf32>
    %67 = arith.negf %60 : vector<2x8x128xf32>
    %68 = math.exp %67 : vector<2x8x128xf32>
    %cst_22 = arith.constant 1.000000e+00 : f32
    %69 = vector.broadcast %cst_22 : f32 to vector<2x8x128xf32>
    %70 = arith.addf %69, %68 : vector<2x8x128xf32>
    %71 = arith.divf %69, %70 : vector<2x8x128xf32>
    %72 = arith.mulf %60, %71 : vector<2x8x128xf32>
    %73 = arith.mulf %72, %66 : vector<2x8x128xf32>
    %74 = arith.addf %54, %73 : vector<2x8x128xf32>
    %c2_i32_23 = arith.constant 2 : i32
    %75 = arith.index_cast %c2_i32_23 : i32 to index
    %c0_24 = arith.constant 0 : index
    %c0_25 = arith.constant 0 : index
    %76 = vector.load %arg4[%75, %c0_24, %c0_25] : memref<8x8x128xf32, #tpu.memory_space<vmem>>, vector<1x8x128xf32>
    %77 = vector.shape_cast %76 : vector<1x8x128xf32> to vector<8x128xf32>
    %78 = vector.shape_cast %77 : vector<8x128xf32> to vector<1x8x128xf32>
    %79 = vector.broadcast %78 : vector<1x8x128xf32> to vector<2x8x128xf32>
    %80 = arith.mulf %33, %79 : vector<2x8x128xf32>
    %81 = arith.index_cast %c2_i32_23 : i32 to index
    %c0_26 = arith.constant 0 : index
    %c0_27 = arith.constant 0 : index
    %82 = vector.load %arg5[%81, %c0_26, %c0_27] : memref<8x8x128xf32, #tpu.memory_space<vmem>>, vector<1x8x128xf32>
    %83 = vector.shape_cast %82 : vector<1x8x128xf32> to vector<8x128xf32>
    %84 = vector.shape_cast %83 : vector<8x128xf32> to vector<1x8x128xf32>
    %85 = vector.broadcast %84 : vector<1x8x128xf32> to vector<2x8x128xf32>
    %86 = arith.mulf %33, %85 : vector<2x8x128xf32>
    %87 = arith.negf %80 : vector<2x8x128xf32>
    %88 = math.exp %87 : vector<2x8x128xf32>
    %cst_28 = arith.constant 1.000000e+00 : f32
    %89 = vector.broadcast %cst_28 : f32 to vector<2x8x128xf32>
    %90 = arith.addf %89, %88 : vector<2x8x128xf32>
    %91 = arith.divf %89, %90 : vector<2x8x128xf32>
    %92 = arith.mulf %80, %91 : vector<2x8x128xf32>
    %93 = arith.mulf %92, %86 : vector<2x8x128xf32>
    %94 = arith.addf %74, %93 : vector<2x8x128xf32>
    %c3_i32 = arith.constant 3 : i32
    %95 = arith.index_cast %c3_i32 : i32 to index
    %c0_29 = arith.constant 0 : index
    %c0_30 = arith.constant 0 : index
    %96 = vector.load %arg4[%95, %c0_29, %c0_30] : memref<8x8x128xf32, #tpu.memory_space<vmem>>, vector<1x8x128xf32>
    %97 = vector.shape_cast %96 : vector<1x8x128xf32> to vector<8x128xf32>
    %98 = vector.shape_cast %97 : vector<8x128xf32> to vector<1x8x128xf32>
    %99 = vector.broadcast %98 : vector<1x8x128xf32> to vector<2x8x128xf32>
    %100 = arith.mulf %33, %99 : vector<2x8x128xf32>
    %101 = arith.index_cast %c3_i32 : i32 to index
    %c0_31 = arith.constant 0 : index
    %c0_32 = arith.constant 0 : index
    %102 = vector.load %arg5[%101, %c0_31, %c0_32] : memref<8x8x128xf32, #tpu.memory_space<vmem>>, vector<1x8x128xf32>
    %103 = vector.shape_cast %102 : vector<1x8x128xf32> to vector<8x128xf32>
    %104 = vector.shape_cast %103 : vector<8x128xf32> to vector<1x8x128xf32>
    %105 = vector.broadcast %104 : vector<1x8x128xf32> to vector<2x8x128xf32>
    %106 = arith.mulf %33, %105 : vector<2x8x128xf32>
    %107 = arith.negf %100 : vector<2x8x128xf32>
    %108 = math.exp %107 : vector<2x8x128xf32>
    %cst_33 = arith.constant 1.000000e+00 : f32
    %109 = vector.broadcast %cst_33 : f32 to vector<2x8x128xf32>
    %110 = arith.addf %109, %108 : vector<2x8x128xf32>
    %111 = arith.divf %109, %110 : vector<2x8x128xf32>
    %112 = arith.mulf %100, %111 : vector<2x8x128xf32>
    %113 = arith.mulf %112, %106 : vector<2x8x128xf32>
    %114 = arith.addf %94, %113 : vector<2x8x128xf32>
    %c4_i32 = arith.constant 4 : i32
    %115 = arith.index_cast %c4_i32 : i32 to index
    %c0_34 = arith.constant 0 : index
    %c0_35 = arith.constant 0 : index
    %116 = vector.load %arg4[%115, %c0_34, %c0_35] : memref<8x8x128xf32, #tpu.memory_space<vmem>>, vector<1x8x128xf32>
    %117 = vector.shape_cast %116 : vector<1x8x128xf32> to vector<8x128xf32>
    %118 = vector.shape_cast %117 : vector<8x128xf32> to vector<1x8x128xf32>
    %119 = vector.broadcast %118 : vector<1x8x128xf32> to vector<2x8x128xf32>
    %120 = arith.mulf %33, %119 : vector<2x8x128xf32>
    %121 = arith.index_cast %c4_i32 : i32 to index
    %c0_36 = arith.constant 0 : index
    %c0_37 = arith.constant 0 : index
    %122 = vector.load %arg5[%121, %c0_36, %c0_37] : memref<8x8x128xf32, #tpu.memory_space<vmem>>, vector<1x8x128xf32>
    %123 = vector.shape_cast %122 : vector<1x8x128xf32> to vector<8x128xf32>
    %124 = vector.shape_cast %123 : vector<8x128xf32> to vector<1x8x128xf32>
    %125 = vector.broadcast %124 : vector<1x8x128xf32> to vector<2x8x128xf32>
    %126 = arith.mulf %33, %125 : vector<2x8x128xf32>
    %127 = arith.negf %120 : vector<2x8x128xf32>
    %128 = math.exp %127 : vector<2x8x128xf32>
    %cst_38 = arith.constant 1.000000e+00 : f32
    %129 = vector.broadcast %cst_38 : f32 to vector<2x8x128xf32>
    %130 = arith.addf %129, %128 : vector<2x8x128xf32>
    %131 = arith.divf %129, %130 : vector<2x8x128xf32>
    %132 = arith.mulf %120, %131 : vector<2x8x128xf32>
    %133 = arith.mulf %132, %126 : vector<2x8x128xf32>
    %134 = arith.addf %114, %133 : vector<2x8x128xf32>
    %c5_i32 = arith.constant 5 : i32
    %135 = arith.index_cast %c5_i32 : i32 to index
    %c0_39 = arith.constant 0 : index
    %c0_40 = arith.constant 0 : index
    %136 = vector.load %arg4[%135, %c0_39, %c0_40] : memref<8x8x128xf32, #tpu.memory_space<vmem>>, vector<1x8x128xf32>
    %137 = vector.shape_cast %136 : vector<1x8x128xf32> to vector<8x128xf32>
    %138 = vector.shape_cast %137 : vector<8x128xf32> to vector<1x8x128xf32>
    %139 = vector.broadcast %138 : vector<1x8x128xf32> to vector<2x8x128xf32>
    %140 = arith.mulf %33, %139 : vector<2x8x128xf32>
    %141 = arith.index_cast %c5_i32 : i32 to index
    %c0_41 = arith.constant 0 : index
    %c0_42 = arith.constant 0 : index
    %142 = vector.load %arg5[%141, %c0_41, %c0_42] : memref<8x8x128xf32, #tpu.memory_space<vmem>>, vector<1x8x128xf32>
    %143 = vector.shape_cast %142 : vector<1x8x128xf32> to vector<8x128xf32>
    %144 = vector.shape_cast %143 : vector<8x128xf32> to vector<1x8x128xf32>
    %145 = vector.broadcast %144 : vector<1x8x128xf32> to vector<2x8x128xf32>
    %146 = arith.mulf %33, %145 : vector<2x8x128xf32>
    %147 = arith.negf %140 : vector<2x8x128xf32>
    %148 = math.exp %147 : vector<2x8x128xf32>
    %cst_43 = arith.constant 1.000000e+00 : f32
    %149 = vector.broadcast %cst_43 : f32 to vector<2x8x128xf32>
    %150 = arith.addf %149, %148 : vector<2x8x128xf32>
    %151 = arith.divf %149, %150 : vector<2x8x128xf32>
    %152 = arith.mulf %140, %151 : vector<2x8x128xf32>
    %153 = arith.mulf %152, %146 : vector<2x8x128xf32>
    %154 = arith.addf %134, %153 : vector<2x8x128xf32>
    %c6_i32 = arith.constant 6 : i32
    %155 = arith.index_cast %c6_i32 : i32 to index
    %c0_44 = arith.constant 0 : index
    %c0_45 = arith.constant 0 : index
    %156 = vector.load %arg4[%155, %c0_44, %c0_45] : memref<8x8x128xf32, #tpu.memory_space<vmem>>, vector<1x8x128xf32>
    %157 = vector.shape_cast %156 : vector<1x8x128xf32> to vector<8x128xf32>
    %158 = vector.shape_cast %157 : vector<8x128xf32> to vector<1x8x128xf32>
    %159 = vector.broadcast %158 : vector<1x8x128xf32> to vector<2x8x128xf32>
    %160 = arith.mulf %33, %159 : vector<2x8x128xf32>
    %161 = arith.index_cast %c6_i32 : i32 to index
    %c0_46 = arith.constant 0 : index
    %c0_47 = arith.constant 0 : index
    %162 = vector.load %arg5[%161, %c0_46, %c0_47] : memref<8x8x128xf32, #tpu.memory_space<vmem>>, vector<1x8x128xf32>
    %163 = vector.shape_cast %162 : vector<1x8x128xf32> to vector<8x128xf32>
    %164 = vector.shape_cast %163 : vector<8x128xf32> to vector<1x8x128xf32>
    %165 = vector.broadcast %164 : vector<1x8x128xf32> to vector<2x8x128xf32>
    %166 = arith.mulf %33, %165 : vector<2x8x128xf32>
    %167 = arith.negf %160 : vector<2x8x128xf32>
    %168 = math.exp %167 : vector<2x8x128xf32>
    %cst_48 = arith.constant 1.000000e+00 : f32
    %169 = vector.broadcast %cst_48 : f32 to vector<2x8x128xf32>
    %170 = arith.addf %169, %168 : vector<2x8x128xf32>
    %171 = arith.divf %169, %170 : vector<2x8x128xf32>
    %172 = arith.mulf %160, %171 : vector<2x8x128xf32>
    %173 = arith.mulf %172, %166 : vector<2x8x128xf32>
    %174 = arith.addf %154, %173 : vector<2x8x128xf32>
    %c7_i32 = arith.constant 7 : i32
    %175 = arith.index_cast %c7_i32 : i32 to index
    %c0_49 = arith.constant 0 : index
    %c0_50 = arith.constant 0 : index
    %176 = vector.load %arg4[%175, %c0_49, %c0_50] : memref<8x8x128xf32, #tpu.memory_space<vmem>>, vector<1x8x128xf32>
    %177 = vector.shape_cast %176 : vector<1x8x128xf32> to vector<8x128xf32>
    %178 = vector.shape_cast %177 : vector<8x128xf32> to vector<1x8x128xf32>
    %179 = vector.broadcast %178 : vector<1x8x128xf32> to vector<2x8x128xf32>
    %180 = arith.mulf %33, %179 : vector<2x8x128xf32>
    %181 = arith.index_cast %c7_i32 : i32 to index
    %c0_51 = arith.constant 0 : index
    %c0_52 = arith.constant 0 : index
    %182 = vector.load %arg5[%181, %c0_51, %c0_52] : memref<8x8x128xf32, #tpu.memory_space<vmem>>, vector<1x8x128xf32>
    %183 = vector.shape_cast %182 : vector<1x8x128xf32> to vector<8x128xf32>
    %184 = vector.shape_cast %183 : vector<8x128xf32> to vector<1x8x128xf32>
    %185 = vector.broadcast %184 : vector<1x8x128xf32> to vector<2x8x128xf32>
    %186 = arith.mulf %33, %185 : vector<2x8x128xf32>
    %187 = arith.negf %180 : vector<2x8x128xf32>
    %188 = math.exp %187 : vector<2x8x128xf32>
    %cst_53 = arith.constant 1.000000e+00 : f32
    %189 = vector.broadcast %cst_53 : f32 to vector<2x8x128xf32>
    %190 = arith.addf %189, %188 : vector<2x8x128xf32>
    %191 = arith.divf %189, %190 : vector<2x8x128xf32>
    %192 = arith.mulf %180, %191 : vector<2x8x128xf32>
    %193 = arith.mulf %192, %186 : vector<2x8x128xf32>
    %194 = arith.addf %174, %193 : vector<2x8x128xf32>
    %c8_i32 = arith.constant 8 : i32
    %195 = vector.shape_cast %194 : vector<2x8x128xf32> to vector<16x128xf32>
    %c0_54 = arith.constant 0 : index
    %c0_55 = arith.constant 0 : index
    %196 = vector.load %arg6[%c0_54, %c0_55] : memref<128x128xf32, #tpu.memory_space<vmem>>, vector<128x128xf32>
    %cst_56 = arith.constant dense<0.000000e+00> : vector<16x128xf32>
    %197 = tpu.matmul %195, %196, %cst_56 {dimension_numbers = #tpu.dot_dimension_numbers<[1], [0], [0], [1], [0, 0, 1, 1], [], []>} : vector<16x128xf32>, vector<128x128xf32>, vector<16x128xf32> -> vector<16x128xf32>
    %198 = vector.shape_cast %197 : vector<16x128xf32> to vector<2x8x128xf32>
    %c0_57 = arith.constant 0 : index
    %c0_58 = arith.constant 0 : index
    %c0_59 = arith.constant 0 : index
    %199 = vector.load %arg7[%c0_57, %c0_58, %c0_59] : memref<2x8x128xf32, #tpu.memory_space<vmem>>, vector<2x8x128xf32>
    tpu.vector_store %arg7[%c0_57, %c0_58, %c0_59], %198 {strides = array<i32>} : memref<2x8x128xf32, #tpu.memory_space<vmem>>, vector<2x8x128xf32>,
    return
  }
  func.func @transform_0(%arg0: i32) -> (i32, i32, i32) {
    %c0_i32 = arith.constant 0 : i32
    %c0_i32_0 = arith.constant 0 : i32
    %c0_i32_1 = arith.constant 0 : i32
    return %arg0, %c0_i32, %c0_i32_0 : i32, i32, i32
  }
  func.func @transform_1(%arg0: i32) -> (i32, i32) {
    %c0_i32 = arith.constant 0 : i32
    %c0_i32_0 = arith.constant 0 : i32
    %c0_i32_1 = arith.constant 0 : i32
    return %c0_i32, %c0_i32_0 : i32, i32
  }
  func.func @transform_2(%arg0: i32) -> (i32, i32) {
    %c0_i32 = arith.constant 0 : i32
    %c0_i32_0 = arith.constant 0 : i32
    %c0_i32_1 = arith.constant 0 : i32
    return %c0_i32, %c0_i32_0 : i32, i32
  }
  func.func @transform_3(%arg0: i32) -> (i32, i32, i32) {
    %c0_i32 = arith.constant 0 : i32
    %c0_i32_0 = arith.constant 0 : i32
    %c0_i32_1 = arith.constant 0 : i32
    %c0_i32_2 = arith.constant 0 : i32
    return %c0_i32, %c0_i32_0, %c0_i32_1 : i32, i32, i32
  }
  func.func @transform_4(%arg0: i32) -> (i32, i32, i32) {
    %c0_i32 = arith.constant 0 : i32
    %c0_i32_0 = arith.constant 0 : i32
    %c0_i32_1 = arith.constant 0 : i32
    %c0_i32_2 = arith.constant 0 : i32
    return %c0_i32, %c0_i32_0, %c0_i32_1 : i32, i32, i32
  }
  func.func @transform_5(%arg0: i32) -> (i32, i32) {
    %c0_i32 = arith.constant 0 : i32
    %c0_i32_0 = arith.constant 0 : i32
    %c0_i32_1 = arith.constant 0 : i32
    return %c0_i32, %c0_i32_0 : i32, i32
  }
  func.func @transform_6(%arg0: i32) -> (i32, i32, i32) {
    %c0_i32 = arith.constant 0 : i32
    %c0_i32_0 = arith.constant 0 : i32
    %c0_i32_1 = arith.constant 0 : i32
    return %arg0, %c0_i32, %c0_i32_0 : i32, i32, i32
  }
}

</mosaic_0001>

<bundles_post_ra>
// kernel: mix_forward.1
= control target key start
LH: loop header
LB: loop body
LE: loop exit
PB: predicated region body
PF: predicated region fallthrough
CT: control target
= control target key end

     0   :  { %11 = vsyncpa [#allocation3], 0  ;;  %s993_s0 = inlined_call_operand.hbm [shape: f32[2,8,128], index: 0, kind: input, shape index: {}]   ;;  %s994_s1 = inlined_call_operand.hbm [shape: f32[8,128], index: 1, kind: input, shape index: {}]   ;;  %s995_s2 = inlined_call_operand.vmem [shape: f32[8,128], index: 2, kind: input, shape index: {}]   ;;  %s996_s3 = inlined_call_operand.hbm [shape: f32[8,8,128], index: 3, kind: input, shape index: {}]   ;;  %s997_s4 = inlined_call_operand.hbm [shape: f32[8,8,128], index: 4, kind: input, shape index: {}]   ;;  %s998_s5 = inlined_call_operand.hbm [shape: f32[128,128], index: 5, kind: input, shape index: {}]   ;;  %s999_s6 = inlined_call_operand.hbm [shape: f32[2,8,128], index: 6, kind: output, shape index: {}]  }
   0x1   :  { %12 = vsyncpa [#allocation6], 0 }
   0x2   :  { %13 = vsyncpa [#allocation9], 0 }
   0x3   :  { %14 = vsyncpa [#allocation4], 0  ;;  %s758_s21 = smov [#allocation5]   ;;  %s618_s25 = scalar_lea.hbm %s994_s1, 128 }
   0x4   :  { %s33_s22 = sshll.u32 %s758_s21, 4  ;;  %p619_p0 = scmp.ne.s32.totalorder %s994_s1, %s618_s25  ;;  %s34_s22 = int_to_ptr.vmem [resolvable:$true] %s33_s22 }
   0x5   :  { %p622_p1 = scmp.lt.u32.totalorder %s618_s25, %s994_s1 }
   0x7   :  { %p624_p2 = pnand %p622_p1, %p619_p0 }
   0x9   :  { %627 = shalt.err (!%p624_p2)
}
   0xa   :  { %s628_s30 = scalar_lea.vmem %s34_s22, 128  ;;  %p633_p4 = scmp.lt.s32.totalorder %s34_s22, %s34_s22 }
   0xb   :  { %p629_p3 = scmp.ne.s32.totalorder %s34_s22, %s628_s30  ;;  %p634_p5 = scmp.lt.s32.totalorder %s628_s30, %s628_s30 }
   0xd   :  { %p635_p6 = por %p634_p5, %p633_p4 }
   0xf   :  { %p636_p7 = pnand %p635_p6, %p629_p3 }
  0x11   :  { %639 = shalt.err (!%p636_p7)
}
  0x12   :  { %36 = dma.hbm_to_vmem [thread:$0]  %s994_s1, 128, %s34_s22, [#allocation6]  }
  0x13   :  { %s759_s9 = smov [#allocation8]   ;;  %s760_s11 = smov [#allocation2]  }
  0x14   :  { %s56_s10 = sshll.u32 %s759_s9, 4  ;;  %s20_s12 = sshll.u32 %s760_s11, 4  ;;  %s57_s10 = int_to_ptr.vmem [resolvable:$true] %s56_s10  ;;  %s21_s12 = int_to_ptr.vmem [resolvable:$true] %s20_s12 }
  0x15   :  { %s640_s15 = scalar_lea.hbm %s997_s4, 1024 }
  0x16   :  { %p641_p8 = scmp.ne.s32.totalorder %s997_s4, %s640_s15  ;;  %p644_p9 = scmp.lt.u32.totalorder %s640_s15, %s997_s4 }
  0x18   :  { %p646_p10 = pnand %p644_p9, %p641_p8 }
  0x1a   :  { %649 = shalt.err (!%p646_p10)
}
  0x1b   :  { %s650_s1 = scalar_lea.vmem %s57_s10, 1024  ;;  %p655_p12 = scmp.lt.s32.totalorder %s57_s10, %s57_s10 }
  0x1c   :  { %p651_p11 = scmp.ne.s32.totalorder %s57_s10, %s650_s1  ;;  %p656_p13 = scmp.lt.s32.totalorder %s650_s1, %s650_s1 }
  0x1e   :  { %p657_p0 = por %p656_p13, %p655_p12 }
  0x20   :  { %p658_p1 = pnand %p657_p0, %p651_p11 }
  0x22   :  { %661 = shalt.err (!%p658_p1)
}
  0x23   :  { %s761_s20 = smov 128   ;;  %s762_s21 = smov 8  }
  0x24   :  { %62 = dma.hbm_to_vmem [thread:$0]  %s997_s4, 1024, %s57_s10, [#allocation9], %s761_s20, %s761_s20, %s762_s21  }
  0x25   :  { %s662_s26 = scalar_lea.hbm %s993_s0, 256 }
  0x26   :  { %p663_p2 = scmp.ne.s32.totalorder %s993_s0, %s662_s26  ;;  %p666_p3 = scmp.lt.u32.totalorder %s662_s26, %s993_s0 }
  0x28   :  { %p668_p4 = pnand %p666_p3, %p663_p2 }
  0x2a   :  { %671 = shalt.err (!%p668_p4)
}
  0x2b   :  { %s672_s7 = scalar_lea.vmem %s21_s12, 256  ;;  %p677_p6 = scmp.lt.s32.totalorder %s21_s12, %s21_s12 }
  0x2c   :  { %p673_p5 = scmp.ne.s32.totalorder %s21_s12, %s672_s7  ;;  %p678_p7 = scmp.lt.s32.totalorder %s672_s7, %s672_s7 }
  0x2e   :  { %p679_p8 = por %p678_p7, %p677_p6 }
  0x30   :  { %p680_p9 = pnand %p679_p8, %p673_p5 }
  0x32   :  { %683 = shalt.err (!%p680_p9)
}
  0x33   :  { %26 = dma.hbm_to_vmem [thread:$0]  %s993_s0, 256, %s21_s12, [#allocation3], %s761_s20, %s761_s20, %s762_s21  }
  0x34   :  { %s763_s9 = smov [#allocation7]   ;;  %s764_s11 = smov [#allocation10]  }
  0x35   :  { %s44_s10 = sshll.u32 %s763_s9, 4  ;;  %s68_s13 = sshll.u32 %s764_s11, 4  ;;  %s45_s10 = int_to_ptr.vmem [resolvable:$true] %s44_s10  ;;  %s69_s13 = int_to_ptr.vmem [resolvable:$true] %s68_s13 }
  0x36   :  { %s684_s16 = scalar_lea.hbm %s996_s3, 1024 }
  0x37   :  { %p685_p10 = scmp.ne.s32.totalorder %s996_s3, %s684_s16  ;;  %p688_p11 = scmp.lt.u32.totalorder %s684_s16, %s996_s3 }
  0x39   :  { %p690_p12 = pnand %p688_p11, %p685_p10 }
  0x3b   :  { %693 = shalt.err (!%p690_p12)
}
  0x3c   :  { %s694_s0 = scalar_lea.vmem %s45_s10, 1024  ;;  %p699_p0 = scmp.lt.s32.totalorder %s45_s10, %s45_s10 }
  0x3d   :  { %p695_p13 = scmp.ne.s32.totalorder %s45_s10, %s694_s0  ;;  %p700_p1 = scmp.lt.s32.totalorder %s694_s0, %s694_s0 }
  0x3f   :  { %p701_p2 = por %p700_p1, %p699_p0 }
  0x41   :  { %p702_p3 = pnand %p701_p2, %p695_p13 }
  0x43   :  { %705 = shalt.err (!%p702_p3)
}
  0x44   :  { %50 = dma.hbm_to_vmem [thread:$0]  %s996_s3, 1024, %s45_s10, [#allocation6], %s761_s20, %s761_s20, %s762_s21  }
  0x45   :  { %s706_s25 = scalar_lea.hbm %s998_s5, 2048 }
  0x46   :  { %p707_p4 = scmp.ne.s32.totalorder %s998_s5, %s706_s25  ;;  %p710_p5 = scmp.lt.u32.totalorder %s706_s25, %s998_s5 }
  0x48   :  { %p712_p6 = pnand %p710_p5, %p707_p4 }
  0x4a   :  { %715 = shalt.err (!%p712_p6)
}
  0x4b   :  { %s716_s30 = scalar_lea.vmem %s69_s13, 2048  ;;  %p721_p8 = scmp.lt.s32.totalorder %s69_s13, %s69_s13 }
  0x4c   :  { %p717_p7 = scmp.ne.s32.totalorder %s69_s13, %s716_s30  ;;  %p722_p9 = scmp.lt.s32.totalorder %s716_s30, %s716_s30 }
  0x4e   :  { %p723_p10 = por %p722_p9, %p721_p8 }
  0x50   :  { %p724_p11 = pnand %p723_p10, %p717_p7 }
  0x52   :  { %727 = shalt.err (!%p724_p11)
}
  0x53   :  { %74 = dma.hbm_to_vmem [thread:$0]  %s998_s5, 2048, %s69_s13, [#allocation9], %s761_s20, %s761_s20, %s762_s21  }
  0x54   :  { %750 = dma.done.wait [#allocation3], 256  }
  0x55   :  { %751 = vsyncadd [#allocation3], 4294967040 }
  0x56   :  { %752 = dma.done.wait [#allocation6], 1152  }
  0x57   :  { %753 = vsyncadd [#allocation6], 4294966144 }
  0x58   :  { %754 = dma.done.wait [#allocation9], 3072  }
  0x59   :  { %755 = vsyncadd [#allocation9], 4294964224  ;;  %v91_v0 = vld [vmem:[#allocation2 + $0x8] sm:$0xff]  ;;  %v90_v1 = vld [vmem:[#allocation2] sm:$0xff]  ;;  %s765_s4 = smov 127   ;;  %s766_s5 = smov 1   ;;  %v100_v26 = vlaneseq }
  0x5a   :  { %94 = vrot.lane.b32.xlu1 %v91_v0, %s765_s4  ;;  %92 = vrot.lane.b32.xlu0 %v90_v1, %s765_s4  ;;  %v331_v2 = vld [vmem:[#allocation10] sm:$0xff]  ;;  %v332_v3 = vld [vmem:[#allocation10 + $0x8] sm:$0xff]  ;;  %v333_v5 = vld [vmem:[#allocation10 + $0x10] sm:$0xff] }
  0x5b   :  { %v512_v4 = vpack.c.bf16 %v332_v3, %v331_v2  ;;  %v334_v6 = vld [vmem:[#allocation10 + $0x18] sm:$0xff]  ;;  %v335_v8 = vld [vmem:[#allocation10 + $0x20] sm:$0xff]  ;;  %v336_v9 = vld [vmem:[#allocation10 + $0x28] sm:$0xff]  ;;  %v101_v27 = vand.u32 127, %v100_v26 }
  0x5c   :  { %v516_v7 = vpack.c.bf16 %v334_v6, %v333_v5  ;;  %v520_v10 = vpack.c.bf16 %v336_v9, %v335_v8  ;;  %v337_v11 = vld [vmem:[#allocation10 + $0x30] sm:$0xff]  ;;  %v338_v12 = vld [vmem:[#allocation10 + $0x38] sm:$0xff]  ;;  %v339_v14 = vld [vmem:[#allocation10 + $0x40] sm:$0xff] }
  0x5d   :  { %513 = vmatprep.subr.bf16.mxu0 %v512_v4  ;;  %v524_v13 = vpack.c.bf16 %v338_v12, %v337_v11  ;;  %v340_v15 = vld [vmem:[#allocation10 + $0x48] sm:$0xff]  ;;  %v341_v17 = vld [vmem:[#allocation10 + $0x50] sm:$0xff]  ;;  %v342_v18 = vld [vmem:[#allocation10 + $0x58] sm:$0xff]  ;;  %v106_v28 = vand.u32 1, %v101_v27 }
  0x5e   :  { %98 = vrot.lane.b32.xlu1 %v91_v0, %s766_s5  ;;  %96 = vrot.lane.b32.xlu0 %v90_v1, %s766_s5  ;;  %v528_v16 = vpack.c.bf16 %v340_v15, %v339_v14  ;;  %v532_v19 = vpack.c.bf16 %v342_v18, %v341_v17  ;;  %v343_v20 = vld [vmem:[#allocation10 + $0x60] sm:$0xff]  ;;  %v344_v21 = vld [vmem:[#allocation10 + $0x68] sm:$0xff]  ;;  %v345_v23 = vld [vmem:[#allocation10 + $0x70] sm:$0xff] }
  0x5f   :  { %515 = vmatpush3.bf16.msra.mxu0 %v512_v4  ;;  %v536_v22 = vpack.c.bf16 %v344_v21, %v343_v20  ;;  %v346_v24 = vld [vmem:[#allocation10 + $0x78] sm:$0xff]  ;;  %vm114_vm0 = vcmp.eq.s32.totalorder %v106_v28, 0  ;;  %v120_v32 = vld [vmem:[%s995_s2] sm:$0xff]  ;;  %v125_v41 = vld [vmem:[#allocation7] sm:$0xff]  ;;  %s767_s2 = smov [#allocation11]  }
  0x60   :  { %517 = vmatprep.subr.bf16.mxu0 %v516_v7  ;;  %v540_v25 = vpack.c.bf16 %v346_v24, %v345_v23  ;;  %v117_v31 = vld [vmem:[#allocation5] sm:$0xff]  ;;  %v150_v44 = vld [vmem:[#allocation7 + $0x8] sm:$0xff]  ;;  %v176_v45 = vld [vmem:[#allocation7 + $0x10] sm:$0xff]  ;;  %s429_s10 = sshll.u32 %s767_s2, 4  ;;  %s430_s10 = int_to_ptr.vmem [resolvable:$true] %s429_s10 }
  0x61   :  { %v119_v33 = vmul.f32 %v117_v31, %v91_v0  ;;  %v118_v34 = vmul.f32 %v117_v31, %v90_v1  ;;  %v202_v50 = vld [vmem:[#allocation7 + $0x18] sm:$0xff]  ;;  %v228_v57 = vld [vmem:[#allocation7 + $0x20] sm:$0xff]  ;;  %v254_v62 = vld [vmem:[#allocation7 + $0x28] sm:$0xff]  ;;  %s728_s11 = scalar_lea.vmem %s430_s10, 256  ;;  %p733_p13 = scmp.lt.s32.totalorder %s430_s10, %s430_s10 }
  0x62   :  { %v280_v3 = vld [vmem:[#allocation7 + $0x30] sm:$0xff]  ;;  %p729_p12 = scmp.ne.s32.totalorder %s430_s10, %s728_s11  ;;  %p734_p0 = scmp.lt.s32.totalorder %s728_s11, %s728_s11 }
  0x63   :  { %519 = vmatpush3.bf16.msra.mxu0 %v516_v7 }
  0x64   :  { %521 = vmatprep.subr.bf16.mxu0 %v520_v10  ;;  %p735_p1 = por %p734_p0, %p733_p13 }
  0x66   :  { %p736_p2 = pnand %p735_p1, %p729_p12 }
  0x67   :  { %523 = vmatpush3.bf16.msra.mxu0 %v520_v10 }
  0x68   :  { %525 = vmatprep.subr.bf16.mxu0 %v524_v13 }
  0x6b   :  { %527 = vmatpush3.bf16.msra.mxu0 %v524_v13 }
  0x6c   :  { %529 = vmatprep.subr.bf16.mxu0 %v528_v16 }
  0x6f   :  { %531 = vmatpush3.bf16.msra.mxu0 %v528_v16 }
  0x70   :  { %533 = vmatprep.subr.bf16.mxu0 %v532_v19 }
  0x73   :  { %535 = vmatpush3.bf16.msra.mxu0 %v532_v19 }
  0x74   :  { %537 = vmatprep.subr.bf16.mxu0 %v536_v22 }
  0x77   :  { %539 = vmatpush3.bf16.msra.mxu0 %v536_v22 }
  0x78   :  { %541 = vmatprep.subr.bf16.mxu0 %v540_v25 }
  0x7b   :  { %543 = vmatpush3.bf16.msra.mxu0 %v540_v25  ;;  %v306_v25 = vld [vmem:[#allocation7 + $0x38] sm:$0xff] }
  0xcc   :  { %v95_v29 = vpop.permute.xlu1 %94  ;;  %v93_v30 = vpop.permute.xlu0 %92 }
  0xd0   :  { %v99_v35 = vpop.permute.xlu1 %98  ;;  %v97_v36 = vpop.permute.xlu0 %96 }
  0xd1   :  { %v116_v37 = vsel %vm114_vm0, %v95_v29, %v99_v35  ;;  %v115_v38 = vsel %vm114_vm0, %v93_v30, %v97_v36 }
  0xd2   :  { %v122_v39 = vmul.f32 %v120_v32, %v116_v37  ;;  %v121_v40 = vmul.f32 %v120_v32, %v115_v38 }
  0xd4   :  { %v878_v42 = vadd.f32 %v122_v39, %v119_v33  ;;  %v880_v43 = vadd.f32 %v121_v40, %v118_v34  ;;  %v128_v40 = vld [vmem:[#allocation8] sm:$0xff] }
  0xd6   :  { %v883_v46 = vmul.f32 %v125_v41, %v880_v43  ;;  %v886_v47 = vmul.f32 %v125_v41, %v878_v42  ;;  %v889_v48 = vmul.f32 %v150_v44, %v880_v43  ;;  %v892_v49 = vmul.f32 %v150_v44, %v878_v42 }
  0xd7   :  { %v897_v53 = vmul.f32 %v176_v45, %v880_v43  ;;  %v900_v54 = vmul.f32 %v176_v45, %v878_v42  ;;  %v906_v59 = vmul.f32 %v202_v50, %v880_v43  ;;  %v910_v61 = vmul.f32 %v202_v50, %v878_v42  ;;  %v154_v45 = vld [vmem:[#allocation8 + $0x8] sm:$0xff] }
  0xd8   :  { %v443_v51 = vmul.f32 -1.442695, %v883_v46  ;;  %v444_v52 = vmul.f32 -1.442695, %v886_v47  ;;  %v445_v55 = vmul.f32 -1.442695, %v889_v48  ;;  %v914_v0 = vmul.f32 %v228_v57, %v880_v43 }
  0xd9   :  { %v446_v56 = vmul.f32 -1.442695, %v892_v49  ;;  %v447_v58 = vmul.f32 -1.442695, %v897_v53  ;;  %v448_v60 = vmul.f32 -1.442695, %v900_v54  ;;  %v917_v1 = vmul.f32 %v228_v57, %v878_v42 }
  0xda   :  { %554 = vpow2.f32 %v443_v51  ;;  %v449_v63 = vmul.f32 -1.442695, %v906_v59  ;;  %v450_v2 = vmul.f32 -1.442695, %v910_v61  ;;  %v451_v4 = vmul.f32 -1.442695, %v914_v0 }
  0xdb   :  { %556 = vpow2.f32 %v444_v52  ;;  %v922_v5 = vmul.f32 %v254_v62, %v880_v43  ;;  %v452_v6 = vmul.f32 -1.442695, %v917_v1  ;;  %v926_v7 = vmul.f32 %v254_v62, %v878_v42 }
  0xdc   :  { %558 = vpow2.f32 %v445_v55  ;;  %v930_v9 = vmul.f32 %v280_v3, %v880_v43  ;;  %v935_v28 = vmul.f32 %v280_v3, %v878_v42  ;;  %v938_v33 = vmul.f32 %v306_v25, %v880_v43 }
  0xdd   :  { %560 = vpow2.f32 %v446_v56  ;;  %v453_v8 = vmul.f32 -1.442695, %v922_v5  ;;  %v454_v10 = vmul.f32 -1.442695, %v926_v7  ;;  %v941_v36 = vmul.f32 %v306_v25, %v878_v42 }
  0xde   :  { %562 = vpow2.f32 %v447_v58  ;;  %v455_v11 = vmul.f32 -1.442695, %v930_v9  ;;  %v456_v38 = vmul.f32 -1.442695, %v935_v28  ;;  %v457_v50 = vmul.f32 -1.442695, %v938_v33 }
  0xdf   :  { %564 = vpow2.f32 %v448_v60  ;;  %v458_v55 = vmul.f32 -1.442695, %v941_v36  ;;  %v129_v57 = vmul.f32 %v128_v40, %v880_v43  ;;  %v130_v58 = vmul.f32 %v128_v40, %v878_v42 }
  0xe0   :  { %566 = vpow2.f32 %v449_v63  ;;  %v155_v63 = vmul.f32 %v154_v45, %v880_v43 }
  0xe1   :  { %568 = vpow2.f32 %v450_v2 }
  0xe2   :  { %570 = vpow2.f32 %v451_v4 }
  0xe3   :  { %572 = vpow2.f32 %v452_v6  ;;  %v156_v6 = vmul.f32 %v154_v45, %v878_v42 }
  0xe4   :  { %v555_v12 = vpop.eup %554  ;;  %574 = vpow2.f32 %v453_v8 }
  0xe5   :  { %v557_v13 = vpop.eup %556  ;;  %v137_v14 = vadd.f32 1.0, %v555_v12  ;;  %576 = vpow2.f32 %v454_v10  ;;  %v180_v12 = vld [vmem:[#allocation8 + $0x10] sm:$0xff] }
  0xe6   :  { %v559_v15 = vpop.eup %558  ;;  %v138_v16 = vadd.f32 1.0, %v557_v13  ;;  %578 = vpow2.f32 %v455_v11 }
  0xe7   :  { %v561_v17 = vpop.eup %560  ;;  %580 = vrcp.f32 %v137_v14  ;;  %v163_v18 = vadd.f32 1.0, %v559_v15 }
  0xe8   :  { %v563_v19 = vpop.eup %562  ;;  %582 = vrcp.f32 %v138_v16  ;;  %v164_v20 = vadd.f32 1.0, %v561_v17  ;;  %v181_v17 = vmul.f32 %v180_v12, %v880_v43 }
  0xe9   :  { %v565_v21 = vpop.eup %564  ;;  %584 = vrcp.f32 %v163_v18  ;;  %v189_v22 = vadd.f32 1.0, %v563_v19 }
  0xea   :  { %v567_v23 = vpop.eup %566  ;;  %586 = vrcp.f32 %v164_v20  ;;  %v190_v24 = vadd.f32 1.0, %v565_v21  ;;  %v206_v20 = vld [vmem:[#allocation8 + $0x18] sm:$0xff]  ;;  %v182_v21 = vmul.f32 %v180_v12, %v878_v42 }
  0xeb   :  { %v569_v26 = vpop.eup %568  ;;  %588 = vrcp.f32 %v189_v22  ;;  %v215_v27 = vadd.f32 1.0, %v567_v23  ;;  %v310_v12 = vld [vmem:[#allocation8 + $0x38] sm:$0xff] }
  0xec   :  { %v571_v29 = vpop.eup %570  ;;  %590 = vrcp.f32 %v190_v24  ;;  %v216_v30 = vadd.f32 1.0, %v569_v26 }
  0xed   :  { %v573_v31 = vpop.eup %572  ;;  %v241_v32 = vadd.f32 1.0, %v571_v29  ;;  %592 = vrcp.f32 %v215_v27  ;;  %v207_v27 = vmul.f32 %v206_v20, %v880_v43  ;;  %v232_v29 = vld [vmem:[#allocation8 + $0x20] sm:$0xff] }
  0xee   :  { %v575_v34 = vpop.eup %574  ;;  %v242_v35 = vadd.f32 1.0, %v573_v31  ;;  %594 = vrcp.f32 %v216_v30  ;;  %v233_v40 = vmul.f32 %v232_v29, %v880_v43 }
  0xef   :  { %v577_v37 = vpop.eup %576  ;;  %v267_v41 = vadd.f32 1.0, %v575_v34  ;;  %596 = vrcp.f32 %v241_v32 }
  0xf0   :  { %v579_v39 = vpop.eup %578  ;;  %598 = vrcp.f32 %v242_v35  ;;  %v268_v3 = vadd.f32 1.0, %v577_v37  ;;  %v208_v35 = vmul.f32 %v206_v20, %v878_v42 }
  0xf1   :  { %v581_v44 = vpop.eup %580  ;;  %600 = vpow2.f32 %v456_v38  ;;  %v293_v13 = vadd.f32 1.0, %v579_v39 }
  0xf2   :  { %v583_v51 = vpop.eup %582  ;;  %v143_v52 = vmul.f32 %v581_v44, %v883_v46  ;;  %602 = vrcp.f32 %v267_v41 }
  0xf3   :  { %v585_v56 = vpop.eup %584  ;;  %v144_v60 = vmul.f32 %v583_v51, %v886_v47  ;;  %604 = vpow2.f32 %v457_v50 }
  0xf4   :  { %v587_v62 = vpop.eup %586  ;;  %v169_v2 = vmul.f32 %v585_v56, %v889_v48  ;;  %v145_v46 = vmul.f32 %v143_v52, %v129_v57  ;;  %606 = vpow2.f32 %v458_v55  ;;  %v234_v52 = vmul.f32 %v232_v29, %v878_v42  ;;  %v258_v55 = vld [vmem:[#allocation8 + $0x28] sm:$0xff] }
  0xf5   :  { %v589_v4 = vpop.eup %588  ;;  %v170_v8 = vmul.f32 %v587_v62, %v892_v49  ;;  %v146_v14 = vmul.f32 %v144_v60, %v130_v58  ;;  %608 = vrcp.f32 %v268_v3  ;;  %v259_v62 = vmul.f32 %v258_v55, %v880_v43  ;;  %v284_v3 = vld [vmem:[#allocation8 + $0x30] sm:$0xff] }
  0xf6   :  { %v591_v10 = vpop.eup %590  ;;  %v171_v11 = vmul.f32 %v169_v2, %v155_v63  ;;  %v195_v47 = vmul.f32 %v589_v4, %v897_v53  ;;  %610 = vrcp.f32 %v293_v13  ;;  %v286_v13 = vmul.f32 %v284_v3, %v878_v42 }
  0xf7   :  { %v172_v15 = vmul.f32 %v170_v8, %v156_v6  ;;  %v593_v16 = vpop.eup %592  ;;  %v196_v18 = vmul.f32 %v591_v10, %v900_v54  ;;  %v285_v10 = vmul.f32 %v284_v3, %v880_v43 }
  0xf8   :  { %v173_v48 = vadd.f32 %v171_v11, %v145_v46  ;;  %v595_v19 = vpop.eup %594  ;;  %v197_v22 = vmul.f32 %v195_v47, %v181_v17  ;;  %v221_v23 = vmul.f32 %v593_v16, %v906_v59  ;;  %v311_v17 = vmul.f32 %v310_v12, %v880_v43 }
  0xf9   :  { %v597_v49 = vpop.eup %596  ;;  %v174_v24 = vadd.f32 %v172_v15, %v146_v14  ;;  %v198_v30 = vmul.f32 %v196_v18, %v182_v21  ;;  %v222_v31 = vmul.f32 %v595_v19, %v910_v61  ;;  %v312_v19 = vmul.f32 %v310_v12, %v878_v42 }
  0xfa   :  { %v599_v53 = vpop.eup %598  ;;  %v199_v26 = vadd.f32 %v197_v22, %v173_v48  ;;  %v223_v37 = vmul.f32 %v221_v23, %v207_v27  ;;  %v247_v38 = vmul.f32 %v597_v49, %v914_v0 }
  0xfb   :  { %v601_v25 = vpop.eup %600  ;;  %v200_v39 = vadd.f32 %v198_v30, %v174_v24  ;;  %v224_v50 = vmul.f32 %v222_v31, %v208_v35  ;;  %v248_v51 = vmul.f32 %v599_v53, %v917_v1  ;;  %v260_v1 = vmul.f32 %v258_v55, %v878_v42 }
  0xfc   :  { %v603_v54 = vpop.eup %602  ;;  %v294_v32 = vadd.f32 1.0, %v601_v25  ;;  %v225_v44 = vadd.f32 %v223_v37, %v199_v26  ;;  %v249_v56 = vmul.f32 %v247_v38, %v233_v40 }
  0xfd   :  { %v605_v34 = vpop.eup %604  ;;  %v273_v57 = vmul.f32 %v603_v54, %v922_v5  ;;  %v226_v0 = vadd.f32 %v224_v50, %v200_v39  ;;  %v250_v63 = vmul.f32 %v248_v51, %v234_v52 }
  0xfe   :  { %v607_v59 = vpop.eup %606  ;;  %612 = vrcp.f32 %v294_v32  ;;  %v319_v41 = vadd.f32 1.0, %v605_v34  ;;  %v251_v60 = vadd.f32 %v249_v56, %v225_v44 }
  0xff   :  { %v320_v45 = vadd.f32 1.0, %v607_v59  ;;  %v609_v61 = vpop.eup %608  ;;  %v275_v4 = vmul.f32 %v273_v57, %v259_v62  ;;  %v252_v6 = vadd.f32 %v250_v63, %v226_v0 }
 0x100   :  { %614 = vrcp.f32 %v319_v41  ;;  %v611_v58 = vpop.eup %610  ;;  %v274_v2 = vmul.f32 %v609_v61, %v926_v7 }
 0x101   :  { %616 = vrcp.f32 %v320_v45  ;;  %v299_v46 = vmul.f32 %v611_v58, %v930_v9  ;;  %v277_v8 = vadd.f32 %v275_v4, %v251_v60 }
 0x102   :  { %v276_v5 = vmul.f32 %v274_v2, %v260_v1 }
 0x103   :  { %v301_v47 = vmul.f32 %v299_v46, %v285_v10 }
 0x104   :  { %v278_v14 = vadd.f32 %v276_v5, %v252_v6 }
 0x105   :  { %v303_v48 = vadd.f32 %v301_v47, %v277_v8 }
 0x108   :  { %v613_v11 = vpop.eup %612 }
 0x109   :  { %v300_v15 = vmul.f32 %v613_v11, %v935_v28 }
 0x10a   :  { %v615_v7 = vpop.eup %614 }
 0x10b   :  { %v617_v16 = vpop.eup %616  ;;  %v325_v9 = vmul.f32 %v615_v7, %v938_v33  ;;  %v302_v18 = vmul.f32 %v300_v15, %v286_v13 }
 0x10c   :  { %v326_v20 = vmul.f32 %v617_v16, %v941_v36 }
 0x10d   :  { %v327_v49 = vmul.f32 %v325_v9, %v311_v17  ;;  %v304_v21 = vadd.f32 %v302_v18, %v278_v14 }
 0x10e   :  { %v328_v22 = vmul.f32 %v326_v20, %v312_v19 }
 0x10f   :  { %v329_v23 = vadd.f32 %v327_v49, %v303_v48 }
 0x110   :  { %v330_v24 = vadd.f32 %v328_v22, %v304_v21 }
 0x111   :  { %509 = vmatprep.mubr.f32.mxu0 %v329_v23 }
 0x112   :  { %510 = vmatmul.mubr.f32.vlgmr.msra.gmra.mrb[0].mxu0 %v330_v24 }
 0x1e5   :  { %v511_v28 = vpop.f32.mrb[0].mxu0 }
 0x1e6   :  { %423 = vst [vmem:[#allocation11 + $0x8] sm:$0xff] %v511_v28  ;;  %v413_v43 = vpop.f32.mrb[1].mxu0 }
 0x1e7   :  { %422 = vst [vmem:[#allocation11] sm:$0xff] %v413_v43 }
 0x1e8   :  { %739 = shalt.err (!%p736_p2)
}
 0x1e9   :  { %s740_s15 = scalar_lea.hbm %s999_s6, 256 }
 0x1ea   :  { %p741_p3 = scmp.ne.s32.totalorder %s999_s6, %s740_s15  ;;  %p744_p4 = scmp.lt.u32.totalorder %s740_s15, %s999_s6 }
 0x1ec   :  { %p746_p5 = pnand %p744_p4, %p741_p3 }
 0x1ee   :  { %749 = shalt.err (!%p746_p5)
}
 0x1ef   :  { %435 = dma.vmem_to_hbm [thread:$0]  %s430_s10, 256, %s999_s6, [#allocation4], %s761_s20, %s761_s20, %s762_s21  }
 0x1f0   :  { %756 = dma.done.wait [#allocation4], 256  }
 0x1f1   :  { %757 = vsyncadd [#allocation4], 4294967040 }
 0x1f2   :  { %439 = vsyncpa [#allocation3], 1 }
 0x1f3   :  { %440 = vsyncpa [#allocation6], 1 }
 0x1f4   :  { %441 = vsyncpa [#allocation9], 1 }
 0x1f5   :  { %442 = vsyncpa [#allocation4], 1 }

</bundles_post_ra>
